<compile_context>
chip_gen: v5e
topology: v5e:2x2
jax: 0.10.0
libtpu: 0.0.40
codegen_flags: <defaults>
</compile_context>

<pallas_src>
import jax
import jax.numpy as jnp
from jax.experimental import pallas as pl
from jax.experimental.pallas import tpu as pltpu


def _cdiv(a, b):
    return -(-a // b)


def _round_up(a, b):
    return _cdiv(a, b) * b


# ----------------------------------------------------------------------------
# Pallas kernel: dense-vreg 1x1 conv (VPU scalar*vector accumulate, fused bias)
# ----------------------------------------------------------------------------
def _conv1x1_kernel(x_ref, w_ref, b_ref, o_ref):
    # x_ref: (Cin, SP, 128) VMEM   -- one pixel tile of one image
    # w_ref: (Cout, Cin)    SMEM   -- scalar weights
    # b_ref: (Cout,)        SMEM   -- scalar bias
    # o_ref: (Cout, SP, 128) VMEM
    cin = x_ref.shape[0]
    cout = o_ref.shape[0]
    for c in range(cout):
        acc = None
        for ci in range(cin):
            term = w_ref[c, ci] * x_ref[ci].astype(jnp.float32)
            acc = term if acc is None else acc + term
        o_ref[c] = (acc + b_ref[c]).astype(o_ref.dtype)


# ----------------------------------------------------------------------------
# Tile selection: pick SP (number of 128-pixel rows per block) and the padded
# row count T so that SP divides T, blocks are (8,128)-friendly, and the
# double-buffered in+out footprint stays within a v7x-safe budget.
# ----------------------------------------------------------------------------
def _pick_pixel_tiling(hw, cin, cout, x_bytes, o_bytes, n,
                       block_budget_bytes=24 * 1024 * 1024):
    t0 = _cdiv(hw, 128)                                    # 128-wide pixel rows
    # Double-buffered input + output bytes per 128-pixel row (no sublane
    # padding in this layout: channels are a leading, untiled dim).
    row_bytes = 2 * 128 * (cin * x_bytes + cout * o_bytes)
    cap = max(8, (block_budget_bytes // row_bytes) // 8 * 8)

    if t0 <= cap:
        sp, t = t0, t0                                     # whole pixel axis per step
    else:
        # Largest multiple-of-8 divisor of t0 under the cap; otherwise pad the
        # pixel axis up to a multiple of the cap (never a whole-H*W block).
        sp = None
        d = 8
        while d <= cap:
            if t0 % d == 0:
                sp = d
            d += 8
        if sp is None:
            sp = cap
        t = _round_up(t0, sp)

    # v7x has 2 TensorCores sharded over the parallel grid axes: make sure the
    # grid exposes >= 2 steps for single-image calls when there is enough work.
    if n == 1 and t // sp <= 1 and t > 8:
        sp = max(8, (t // 2) // 8 * 8)
        t = _round_up(t, sp)
    return sp, t


# ----------------------------------------------------------------------------
# OutConv forward (exact PyTorch semantics, NCHW in / NCHW out, native dtype).
# ----------------------------------------------------------------------------
def out_conv_forward(params, x_nchw):
    w = params["w"]                      # (Cout, Cin, 1, 1) -- PyTorch layout
    b = params["b"]                      # (Cout,)
    n, cin, h, wdim = x_nchw.shape
    cout = w.shape[0]
    hw = h * wdim

    out_dtype = x_nchw.dtype
    x_bytes = jnp.dtype(x_nchw.dtype).itemsize
    o_bytes = jnp.dtype(out_dtype).itemsize

    sp, t = _pick_pixel_tiling(hw, cin, cout, x_bytes, o_bytes, n)
    hw_pad = t * 128

    # Free per-batch reshape (no transpose / im2col); pad pixels only if the
    # pixel count is not already 128*SP aligned.
    x3 = x_nchw.reshape(n, cin, hw)
    if hw_pad != hw:
        x3 = jnp.pad(x3, ((0, 0), (0, 0), (0, hw_pad - hw)))
    x4 = x3.reshape(n, cin, t, 128)

    wm = w.reshape(cout, cin).astype(jnp.float32)          # tiny -> SMEM scalars
    bm = b.reshape(cout).astype(jnp.float32)

    grid = (n, t // sp)

    out4 = pl.pallas_call(
        _conv1x1_kernel,
        out_shape=jax.ShapeDtypeStruct((n, cout, t, 128), out_dtype),
        grid=grid,
        in_specs=[
            # x: one image (squeezed batch dim), one (SP, 128) pixel tile per channel
            pl.BlockSpec((None, cin, sp, 128), lambda i, p: (i, 0, p, 0)),
            # weights / bias: whole (tiny) arrays resident in SMEM
            pl.BlockSpec(memory_space=pltpu.MemorySpace.SMEM),
            pl.BlockSpec(memory_space=pltpu.MemorySpace.SMEM),
        ],
        out_specs=pl.BlockSpec((None, cout, sp, 128), lambda i, p: (i, 0, p, 0)),
        compiler_params=pltpu.CompilerParams(
            dimension_semantics=("parallel", "parallel"),
            vmem_limit_bytes=48 * 1024 * 1024,
        ),
    )(x4, wm, bm)

    out3 = out4.reshape(n, cout, hw_pad)
    if hw_pad != hw:
        out3 = out3[:, :, :hw]
    return out3.reshape(n, cout, h, wdim)


def init_params(key, in_channels, out_channels):
    kw, kb = jax.random.split(key)
    f32 = jnp.float32
    return {
        # Conv2d(in_ch, out_ch, kernel_size=1): weight (Cout, Cin, 1, 1), bias (Cout,)
        "w": 0.1 * jax.random.normal(kw, (out_channels, in_channels, 1, 1), f32),
        "b": 0.05 * jax.random.normal(kb, (out_channels,), f32),
    }


if __name__ == "__main__":
    in_channels, out_channels = 4, 2
    key = jax.random.PRNGKey(0)
    kx, kp = jax.random.split(key)

    x = jax.random.normal(kx, (2, in_channels, 16, 16), jnp.float32)
    params = init_params(kp, in_channels, out_channels)

    out = jax.jit(out_conv_forward)(params, x)
    out = jax.block_until_ready(out)

    # Reference: plain-JAX 1x1 conv.
    ref = (
        jnp.einsum("oc,nchw->nohw", params["w"].reshape(out_channels, in_channels), x)
        + params["b"][None, :, None, None]
    )

    assert out.shape == (2, out_channels, 16, 16), out.shape
    assert out.dtype == x.dtype, out.dtype
    assert bool(jnp.all(jnp.isfinite(out)))
    assert bool(jnp.allclose(out, ref, atol=1e-4, rtol=1e-4)), float(
        jnp.max(jnp.abs(out - ref))
    )
    print("KERNEL_OK")
</pallas_src>

<mosaic_0001>
module attributes {stable_mosaic.version = 11 : i64} {
  func.func @_conv1x1_kernel(%arg0: i32, %arg1: i32, %arg2: memref<1x4x2x128xf32, #tpu.memory_space<vmem>>, %arg3: memref<2x4xf32, #tpu.memory_space<smem>>, %arg4: memref<2xf32, #tpu.memory_space<smem>>, %arg5: memref<1x2x2x128xf32, #tpu.memory_space<vmem>>) attributes {dimension_semantics = [#tpu.dimension_semantics<parallel>, #tpu.dimension_semantics<parallel>], iteration_bounds = array<i64: 2, 1>, scalar_prefetch = 0 : i64, scratch_operands = 0 : i64, tpu.core_type = #tpu.core_type<tc>, window_params = [{transform_indices = @transform_0, window_bounds = array<i64: 1, 4, 2, 128>}, {transform_indices = @transform_1, window_bounds = array<i64: 2, 4>}, {transform_indices = @transform_2, window_bounds = array<i64: 2>}, {transform_indices = @transform_3, window_bounds = array<i64: 1, 2, 2, 128>}]} {
    %c0 = arith.constant 0 : index
    %c0_0 = arith.constant 0 : index
    %0 = memref.load %arg3[%c0, %c0_0] : memref<2x4xf32, #tpu.memory_space<smem>>
    %c0_1 = arith.constant 0 : index
    %c0_2 = arith.constant 0 : index
    %c0_3 = arith.constant 0 : index
    %c0_4 = arith.constant 0 : index
    %1 = vector.load %arg2[%c0_1, %c0_2, %c0_3, %c0_4] : memref<1x4x2x128xf32, #tpu.memory_space<vmem>>, vector<1x1x2x128xf32>
    %2 = vector.shape_cast %1 : vector<1x1x2x128xf32> to vector<2x128xf32>
    %3 = vector.broadcast %0 : f32 to vector<2x128xf32>
    %4 = arith.mulf %3, %2 : vector<2x128xf32>
    %c0_5 = arith.constant 0 : index
    %c1 = arith.constant 1 : index
    %5 = memref.load %arg3[%c0_5, %c1] : memref<2x4xf32, #tpu.memory_space<smem>>
    %c0_6 = arith.constant 0 : index
    %c1_7 = arith.constant 1 : index
    %c0_8 = arith.constant 0 : index
    %c0_9 = arith.constant 0 : index
    %6 = vector.load %arg2[%c0_6, %c1_7, %c0_8, %c0_9] : memref<1x4x2x128xf32, #tpu.memory_space<vmem>>, vector<1x1x2x128xf32>
    %7 = vector.shape_cast %6 : vector<1x1x2x128xf32> to vector<2x128xf32>
    %8 = vector.broadcast %5 : f32 to vector<2x128xf32>
    %9 = arith.mulf %8, %7 : vector<2x128xf32>
    %10 = arith.addf %4, %9 : vector<2x128xf32>
    %c0_10 = arith.constant 0 : index
    %c2 = arith.constant 2 : index
    %11 = memref.load %arg3[%c0_10, %c2] : memref<2x4xf32, #tpu.memory_space<smem>>
    %c0_11 = arith.constant 0 : index
    %c2_12 = arith.constant 2 : index
    %c0_13 = arith.constant 0 : index
    %c0_14 = arith.constant 0 : index
    %12 = vector.load %arg2[%c0_11, %c2_12, %c0_13, %c0_14] : memref<1x4x2x128xf32, #tpu.memory_space<vmem>>, vector<1x1x2x128xf32>
    %13 = vector.shape_cast %12 : vector<1x1x2x128xf32> to vector<2x128xf32>
    %14 = vector.broadcast %11 : f32 to vector<2x128xf32>
    %15 = arith.mulf %14, %13 : vector<2x128xf32>
    %16 = arith.addf %10, %15 : vector<2x128xf32>
    %c0_15 = arith.constant 0 : index
    %c3 = arith.constant 3 : index
    %17 = memref.load %arg3[%c0_15, %c3] : memref<2x4xf32, #tpu.memory_space<smem>>
    %c0_16 = arith.constant 0 : index
    %c3_17 = arith.constant 3 : index
    %c0_18 = arith.constant 0 : index
    %c0_19 = arith.constant 0 : index
    %18 = vector.load %arg2[%c0_16, %c3_17, %c0_18, %c0_19] : memref<1x4x2x128xf32, #tpu.memory_space<vmem>>, vector<1x1x2x128xf32>
    %19 = vector.shape_cast %18 : vector<1x1x2x128xf32> to vector<2x128xf32>
    %20 = vector.broadcast %17 : f32 to vector<2x128xf32>
    %21 = arith.mulf %20, %19 : vector<2x128xf32>
    %22 = arith.addf %16, %21 : vector<2x128xf32>
    %c0_20 = arith.constant 0 : index
    %23 = memref.load %arg4[%c0_20] : memref<2xf32, #tpu.memory_space<smem>>
    %24 = vector.broadcast %23 : f32 to vector<2x128xf32>
    %25 = arith.addf %22, %24 : vector<2x128xf32>
    %c0_21 = arith.constant 0 : index
    %c0_22 = arith.constant 0 : index
    %c0_23 = arith.constant 0 : index
    %c0_24 = arith.constant 0 : index
    %26 = vector.load %arg5[%c0_21, %c0_22, %c0_23, %c0_24] : memref<1x2x2x128xf32, #tpu.memory_space<vmem>>, vector<1x1x2x128xf32>
    %27 = vector.shape_cast %26 : vector<1x1x2x128xf32> to vector<2x128xf32>
    %28 = vector.shape_cast %25 : vector<2x128xf32> to vector<1x1x2x128xf32>
    tpu.vector_store %arg5[%c0_21, %c0_22, %c0_23, %c0_24], %28 {strides = array<i32>} : memref<1x2x2x128xf32, #tpu.memory_space<vmem>>, vector<1x1x2x128xf32>,
    %c1_25 = arith.constant 1 : index
    %c0_26 = arith.constant 0 : index
    %29 = memref.load %arg3[%c1_25, %c0_26] : memref<2x4xf32, #tpu.memory_space<smem>>
    %c0_27 = arith.constant 0 : index
    %c0_28 = arith.constant 0 : index
    %c0_29 = arith.constant 0 : index
    %c0_30 = arith.constant 0 : index
    %30 = vector.load %arg2[%c0_27, %c0_28, %c0_29, %c0_30] : memref<1x4x2x128xf32, #tpu.memory_space<vmem>>, vector<1x1x2x128xf32>
    %31 = vector.shape_cast %30 : vector<1x1x2x128xf32> to vector<2x128xf32>
    %32 = vector.broadcast %29 : f32 to vector<2x128xf32>
    %33 = arith.mulf %32, %31 : vector<2x128xf32>
    %c1_31 = arith.constant 1 : index
    %c1_32 = arith.constant 1 : index
    %34 = memref.load %arg3[%c1_31, %c1_32] : memref<2x4xf32, #tpu.memory_space<smem>>
    %c0_33 = arith.constant 0 : index
    %c1_34 = arith.constant 1 : index
    %c0_35 = arith.constant 0 : index
    %c0_36 = arith.constant 0 : index
    %35 = vector.load %arg2[%c0_33, %c1_34, %c0_35, %c0_36] : memref<1x4x2x128xf32, #tpu.memory_space<vmem>>, vector<1x1x2x128xf32>
    %36 = vector.shape_cast %35 : vector<1x1x2x128xf32> to vector<2x128xf32>
    %37 = vector.broadcast %34 : f32 to vector<2x128xf32>
    %38 = arith.mulf %37, %36 : vector<2x128xf32>
    %39 = arith.addf %33, %38 : vector<2x128xf32>
    %c1_37 = arith.constant 1 : index
    %c2_38 = arith.constant 2 : index
    %40 = memref.load %arg3[%c1_37, %c2_38] : memref<2x4xf32, #tpu.memory_space<smem>>
    %c0_39 = arith.constant 0 : index
    %c2_40 = arith.constant 2 : index
    %c0_41 = arith.constant 0 : index
    %c0_42 = arith.constant 0 : index
    %41 = vector.load %arg2[%c0_39, %c2_40, %c0_41, %c0_42] : memref<1x4x2x128xf32, #tpu.memory_space<vmem>>, vector<1x1x2x128xf32>
    %42 = vector.shape_cast %41 : vector<1x1x2x128xf32> to vector<2x128xf32>
    %43 = vector.broadcast %40 : f32 to vector<2x128xf32>
    %44 = arith.mulf %43, %42 : vector<2x128xf32>
    %45 = arith.addf %39, %44 : vector<2x128xf32>
    %c1_43 = arith.constant 1 : index
    %c3_44 = arith.constant 3 : index
    %46 = memref.load %arg3[%c1_43, %c3_44] : memref<2x4xf32, #tpu.memory_space<smem>>
    %c0_45 = arith.constant 0 : index
    %c3_46 = arith.constant 3 : index
    %c0_47 = arith.constant 0 : index
    %c0_48 = arith.constant 0 : index
    %47 = vector.load %arg2[%c0_45, %c3_46, %c0_47, %c0_48] : memref<1x4x2x128xf32, #tpu.memory_space<vmem>>, vector<1x1x2x128xf32>
    %48 = vector.shape_cast %47 : vector<1x1x2x128xf32> to vector<2x128xf32>
    %49 = vector.broadcast %46 : f32 to vector<2x128xf32>
    %50 = arith.mulf %49, %48 : vector<2x128xf32>
    %51 = arith.addf %45, %50 : vector<2x128xf32>
    %c1_49 = arith.constant 1 : index
    %52 = memref.load %arg4[%c1_49] : memref<2xf32, #tpu.memory_space<smem>>
    %53 = vector.broadcast %52 : f32 to vector<2x128xf32>
    %54 = arith.addf %51, %53 : vector<2x128xf32>
    %c0_50 = arith.constant 0 : index
    %c1_51 = arith.constant 1 : index
    %c0_52 = arith.constant 0 : index
    %c0_53 = arith.constant 0 : index
    %55 = vector.load %arg5[%c0_50, %c1_51, %c0_52, %c0_53] : memref<1x2x2x128xf32, #tpu.memory_space<vmem>>, vector<1x1x2x128xf32>
    %56 = vector.shape_cast %55 : vector<1x1x2x128xf32> to vector<2x128xf32>
    %57 = vector.shape_cast %54 : vector<2x128xf32> to vector<1x1x2x128xf32>
    tpu.vector_store %arg5[%c0_50, %c1_51, %c0_52, %c0_53], %57 {strides = array<i32>} : memref<1x2x2x128xf32, #tpu.memory_space<vmem>>, vector<1x1x2x128xf32>,
    return
  }
  func.func @transform_0(%arg0: i32, %arg1: i32) -> (i32, i32, i32, i32) {
    %c0_i32 = arith.constant 0 : i32
    %c0_i32_0 = arith.constant 0 : i32
    %c0_i32_1 = arith.constant 0 : i32
    return %arg0, %c0_i32, %arg1, %c0_i32_0 : i32, i32, i32, i32
  }
  func.func @transform_1(%arg0: i32, %arg1: i32) -> (i32, i32) {
    %c0_i32 = arith.constant 0 : i32
    %c0_i32_0 = arith.constant 0 : i32
    %c0_i32_1 = arith.constant 0 : i32
    return %c0_i32, %c0_i32_0 : i32, i32
  }
  func.func @transform_2(%arg0: i32, %arg1: i32) -> i32 {
    %c0_i32 = arith.constant 0 : i32
    %c0_i32_0 = arith.constant 0 : i32
    return %c0_i32 : i32
  }
  func.func @transform_3(%arg0: i32, %arg1: i32) -> (i32, i32, i32, i32) {
    %c0_i32 = arith.constant 0 : i32
    %c0_i32_0 = arith.constant 0 : i32
    %c0_i32_1 = arith.constant 0 : i32
    return %arg0, %c0_i32, %arg1, %c0_i32_0 : i32, i32, i32, i32
  }
}

</mosaic_0001>

<bundles_post_ra>
// kernel: out_conv_forward.1
= control target key start
LH: loop header
LB: loop body
LE: loop exit
PB: predicated region body
PF: predicated region fallthrough
CT: control target
= control target key end

     0   :  { %8 = vsyncpa [#allocation3], 0  ;;  %s618_s0 = inlined_call_operand.vmem [shape: f32[2,4,2,128], index: 0, kind: input, shape index: {}]   ;;  %s619_s1 = inlined_call_operand.vmem [shape: f32[2,4], index: 1, kind: input, shape index: {}]   ;;  %s620_s2 = inlined_call_operand.vmem [shape: f32[2], index: 2, kind: input, shape index: {}]   ;;  %s621_s3 = inlined_call_operand.vmem [shape: f32[2,2,2,128], index: 3, kind: output, shape index: {}]  }
   0x1   :  { %9 = vsyncpa [#allocation5], 0  ;;  %s546_s12 = smov 0   ;;  %s548_s13 = smov 0  }
   0x2   :  { %s550_s14 = smov 0  }
   0x3 LB: > { %s385_s15 = sadd.s32 4294967295, %s522_s14   ;;  %s27_s16 = sadd.s32 1, %s518_s13  ;;  %s522_s14 = sphi %s550_s14, %s15_s14   ;;  %s518_s13 = sphi %s548_s13, %s624_s13   ;;  %s514_s12 = sphi %s546_s12, %s623_s12  }
   0x4   : > { %p29_p0 = scmp.ge.s32.totalorder %s27_s16, 2  ;;  %p387_p1 = scmp.ge.s32.totalorder %s522_s14, 1 }
   0x5   : > { %p130_p2 = scmp.lt.s32.totalorder %s522_s14, 3  ;;  %p567_p4 = scmp.eq.s32.totalorder %s385_s15, 0 }
   0x6   : > { %s626_s16 = smov (%p29_p0, %s27_s16), 0  ;;  %s142_s20 = sshll.u32 %s619_s1, 4  ;;  %s143_s20 = int_to_ptr.vmem [resolvable:$true] %s142_s20 }
   0x7   : > { %p131_p3 = pnand %p387_p1, %p130_p2  ;;  %s152_s23 = sshll.u32 %s620_s2, 4  ;;  %s153_s23 = int_to_ptr.vmem [resolvable:$true] %s152_s23 }
   0x8   : > { %s524_s24 = smov [#allocation2]   ;;  %s525_s25 = smov [#allocation4]  }
   0x9   : > { %p425_p5 = pneg %p131_p3 }
   0xa   : > { %176 = sbr.rel (%p131_p3) target bundleno = 45 (0x2d), region = 32 }
   0xb   : > { %p426_p6 = pnand %p567_p4, %p425_p5 }
   0xd   : > { %428 = dma.vmem_to_smem (!%p426_p6), %s143_s20, 32, %s524_s24, [#allocation3]  }
   0xe   : > { %431 = dma.vmem_to_smem (!%p426_p6), %s153_s23, 16, %s525_s25, [#allocation5]  }
   0xf   : > { %505 = dma.done.wait (%p567_p4), [#allocation3], 32  }
  0x10   : > { %507 = vsyncadd (%p567_p4), [#allocation3], 4294967264 }
  0x11   : > { %509 = dma.done.wait (%p567_p4), [#allocation5], 16  }
  0x12   : > { %511 = vsyncadd (%p567_p4), [#allocation5], 4294967280 }
  0x13   : > { %188 = sfence }
  0x14   : > { %p213_p7 = scmp.lt.s32.totalorder %s514_s12, 1  ;;  %s229_s26 = sld [smem:[#allocation2]] }
  0x15   : > { %s398_s27 = sld [smem:[#allocation2 + $0x1]] }
  0x16   : > { %s628_s12 = smov (!%p213_p7, %s514_s12), 1  ;;  %s400_s28 = sld [smem:[#allocation2 + $0x2]] }
  0x17   : > { %s415_s29 = sshll.u32 %s628_s12, 3  ;;  %s402_s6 = sld [smem:[#allocation2 + $0x3]] }
  0x18   : > { %s595_s5 = scalar_lea.vmem %s618_s0, %s415_s29  ;;  %s251_s7 = sld [smem:[#allocation4]] }
  0x19   : > { %v230_v0 = vld [vmem:[%s595_s5] sm:$0x3]  ;;  %v399_v2 = vld [vmem:[%s595_s5 + $0x2] sm:$0x3]  ;;  %v401_v5 = vld [vmem:[%s595_s5 + $0x4] sm:$0x3] }
  0x1a   : > { %v231_v1 = vstv %s229_s26  ;;  %s404_s8 = sld [smem:[#allocation2 + $0x80]]  ;;  %v403_v10 = vld [vmem:[%s595_s5 + $0x6] sm:$0x3]  ;;  %v256_v13 = vld [vmem:[%s595_s5] sm:$0x3]  ;;  %s416_s15 = sshll.u32 %s628_s12, 2 }
  0x1b   : > { %v232_v3 = vmul.f32 %v231_v1, %v230_v0  ;;  %v236_v4 = vstv %s398_s27  ;;  %s405_s9 = sld [smem:[#allocation2 + $0x81]]  ;;  %v406_v15 = vld [vmem:[%s595_s5 + $0x2] sm:$0x3]  ;;  %v408_v18 = vld [vmem:[%s595_s5 + $0x4] sm:$0x3]  ;;  %s228_s20 = scalar_lea.vmem %s621_s3, %s416_s15 }
  0x1c   : > { %v237_v6 = vmul.f32 %v399_v2, %v236_v4  ;;  %v242_v7 = vstv %s400_s28  ;;  %s407_s10 = sld [smem:[#allocation2 + $0x82]]  ;;  %v410_v22 = vld [vmem:[%s595_s5 + $0x6] sm:$0x3] }
  0x1d   : > { %v243_v9 = vmul.f32 %v401_v5, %v242_v7  ;;  %s409_s11 = sld [smem:[#allocation2 + $0x83]]  ;;  %v248_v12 = vstv %s402_s6 }
  0x1e   : > { %v238_v8 = vadd.f32 %v237_v6, %v232_v3  ;;  %v249_v14 = vmul.f32 %v403_v10, %v248_v12  ;;  %s411_s17 = sld [smem:[#allocation4 + $0x1]]  ;;  %v252_v16 = vstv %s251_s7 }
  0x20   : > { %v244_v11 = vadd.f32 %v243_v9, %v238_v8  ;;  %v257_v17 = vstv %s404_s8 }
  0x21   : > { %v258_v20 = vmul.f32 %v257_v17, %v256_v13  ;;  %v261_v21 = vstv %s405_s9 }
  0x22   : > { %v250_v19 = vadd.f32 %v249_v14, %v244_v11  ;;  %v262_v23 = vmul.f32 %v406_v15, %v261_v21  ;;  %v266_v24 = vstv %s407_s10 }
  0x23   : > { %v267_v26 = vmul.f32 %v408_v18, %v266_v24  ;;  %v271_v27 = vstv %s409_s11 }
  0x24   : > { %v253_v25 = vadd.f32 %v252_v16, %v250_v19  ;;  %v263_v28 = vadd.f32 %v262_v23, %v258_v20  ;;  %v272_v29 = vmul.f32 %v410_v22, %v271_v27  ;;  %v275_v31 = vstv %s411_s17 }
  0x26   : > { %254 = vst [vmem:[%s228_s20] sm:$0x3] %v253_v25  ;;  %v268_v30 = vadd.f32 %v267_v26, %v263_v28 }
  0x28   : > { %v273_v32 = vadd.f32 %v272_v29, %v268_v30 }
  0x2a   : > { %v276_v33 = vadd.f32 %v275_v31, %v273_v32 }
  0x2c   : > { %412 = vst [vmem:[%s228_s20 + $0x2] sm:$0x3] %v276_v33 }
  0x2d PF: > { %s15_s14 = sadd.s32 1, %s522_s14   ;;  %s623_s12 = smov %s518_s13 }
  0x2e   : > { %p12_p8 = scmp.ge.s32.totalorder %s15_s14, 4   ;;  %s624_s13 = smov %s626_s16 }
  0x30   :  { %14 = sbr.rel (!%p12_p8) target bundleno = 3 (0x3), region = 75 }
  0x35   :  { %306 = vsyncpa [#allocation3], 1 }
  0x36   :  { %308 = vsyncpa [#allocation3 + $0x1], 1 }
  0x37   :  { %309 = vsyncpa [#allocation5], 1 }

</bundles_post_ra>
